<compile_context>
chip_gen: v6e
topology: v6e:2x2x1
jax: 0.10.0
libtpu: 0.0.40
codegen_flags: <defaults>
</compile_context>

<pallas_src>
import jax
import jax.numpy as jnp
from jax.experimental import pallas as pl
from jax.experimental.pallas import tpu as pltpu


# ----------------------------------------------------------------------------
# Pallas kernel: hoisted input projection + unrolled LSTM recurrence + value MLP.
# Gate column order is (i, f, o, g); init_params permutes w_ih / w_hh / bias
# consistently.
# ----------------------------------------------------------------------------
def critic_kernel(xt_ref,            # (T, TB, F)  float32, time-major batch tile
                  wih_ref,           # (F, 4H)     gate cols in (i, f, o, g) order
                  whh_ref,           # (H, 4H)     gate cols in (i, f, o, g) order
                  blstm_ref,         # (1, 4H)     (= b_ih + b_hh, permuted)
                  w1_ref, b1_ref,    # (H, 2H), (1, 2H)
                  w2_ref, b2_ref,    # (2H, 2H), (1, 2H)
                  w3_ref, b3_ref,    # (2H, 2H), (1, 2H)
                  wv_ref, bv_ref,    # (2H, A), (1, A)   (NormedLinear, scale=0.1)
                  out_ref):          # (TB, A)
    T, TB, F = xt_ref.shape
    H = whh_ref.shape[0]

    whh = whh_ref[...]

    # ---- Hoisted input projection: ONE matmul for all timesteps (off the chain). ----
    # (T, TB, F) -> (T*TB, F) merges the major dim into sublanes (TB % 8 == 0): no-op.
    xw = jnp.dot(xt_ref[...].reshape(T * TB, F), wih_ref[...],
                 preferred_element_type=jnp.float32) + blstm_ref[...]
    xw = xw.reshape(T, TB, 4 * H)              # xw[t] = one contiguous (TB, 4H) tile

    # ---- Recurrence: fully unrolled; only h @ W_hh stays on the serial chain. ----
    def activations(gates):
        sig = jax.nn.sigmoid(gates[:, :3 * H])     # [ i | f | o ]  -> one EUP slab
        g_g = jnp.tanh(gates[:, 3 * H:])           # [ g ]          -> one EUP slab
        return sig, g_g

    # t = 0: h0 = c0 = 0  =>  gates = xW[0]; c = i * g  (skip the zero matmul / fma).
    sig, g_g = activations(xw[0])
    c = sig[:, :H] * g_g
    h = sig[:, 2 * H:3 * H] * jnp.tanh(c)
    for t in range(1, T):
        gates = xw[t] + jnp.dot(h, whh, preferred_element_type=jnp.float32)
        sig, g_g = activations(gates)
        c = sig[:, H:2 * H] * c + sig[:, :H] * g_g   # f*c + i*g
        h = sig[:, 2 * H:3 * H] * jnp.tanh(c)        # o*tanh(c)

    # ---- Value MLP head (extract_states == h_T for 1-layer, unidirectional). ----
    f1 = jnp.maximum(
        jnp.dot(h, w1_ref[...], preferred_element_type=jnp.float32) + b1_ref[...], 0.0)
    f2 = jnp.maximum(
        jnp.dot(f1, w2_ref[...], preferred_element_type=jnp.float32) + b2_ref[...], 0.0)
    f3 = jnp.maximum(
        jnp.dot(f2, w3_ref[...], preferred_element_type=jnp.float32) + b3_ref[...], 0.0)
    value = jnp.dot(f3, wv_ref[...], preferred_element_type=jnp.float32) + bv_ref[...]
    out_ref[...] = value.astype(out_ref.dtype)


# ----------------------------------------------------------------------------
# Wrappers
# ----------------------------------------------------------------------------
def _resident(shape):
    """Full-array block with a constant index_map: stays VMEM-resident across grid."""
    zeros = (0,) * len(shape)
    return pl.BlockSpec(shape, lambda i: zeros)


@jax.jit
def critic_forward(x, params):
    """mode='batch': x (B, T, F) float32, batch_first -> value (B, A)."""
    B, T, F = x.shape
    A = params["bv"].shape[-1]

    # Batch tiling: TB rows per grid step. Small batches -> single step; large
    # batches -> pipelined x DMA + megacore sharding ("parallel").
    if B <= 128:
        B_pad = max(8, ((B + 7) // 8) * 8)
        TB = B_pad
    else:
        TB = 128
        B_pad = ((B + TB - 1) // TB) * TB
    if B_pad != B:
        # Zero rows are independent of real rows in an LSTM/MLP; sliced off below.
        x = jnp.pad(x, ((0, B_pad - B), (0, 0), (0, 0)))

    # Time-major so each per-step gate slab inside the kernel is one contiguous tile.
    xt = jnp.swapaxes(x, 0, 1)                      # (T, B_pad, F)

    operands = (
        xt,
        params["w_ih"], params["w_hh"], params["b_lstm"],
        params["w1"], params["b1"],
        params["w2"], params["b2"],
        params["w3"], params["b3"],
        params["wv"], params["bv"],
    )
    in_specs = [pl.BlockSpec((T, TB, F), lambda i: (0, i, 0))]
    in_specs += [_resident(op.shape) for op in operands[1:]]

    out = pl.pallas_call(
        critic_kernel,
        out_shape=jax.ShapeDtypeStruct((B_pad, A), jnp.float32),
        grid=(B_pad // TB,),
        in_specs=in_specs,
        out_specs=pl.BlockSpec((TB, A), lambda i: (i, 0)),
        compiler_params=pltpu.CompilerParams(dimension_semantics=("parallel",)),
    )(*operands)
    return out[:B]


def critic_forward_single(s, params):
    """mode='forward': s (T, F) single sequence -> value (A,) (flattened, as PyTorch)."""
    return critic_forward(s[None], params)[0]


# ----------------------------------------------------------------------------
# Deterministic parameter construction (synthetic; PyTorch-style uniform init).
# LSTM gate units are permuted from PyTorch order (i, f, g, o) to (i, f, o, g)
# consistently across w_ih, w_hh and the merged bias.
# ----------------------------------------------------------------------------
def init_params(key, n_features, n_hidden, n_action):
    H, F, A = n_hidden, n_features, n_action
    last_hidden = 2 * H  # feature_extractor = H * n_layers * directions = H

    ks = jax.random.split(key, 12)

    def unif(k, shape, bound):
        return jax.random.uniform(k, shape, jnp.float32, -bound, bound)

    # LSTM (PyTorch layout: weight_ih (4H, F), weight_hh (4H, H)); k = 1/sqrt(H)
    kb = 1.0 / jnp.sqrt(jnp.float32(H))
    w_ih_t = unif(ks[0], (4 * H, F), kb)
    w_hh_t = unif(ks[1], (4 * H, H), kb)
    b_ih = unif(ks[2], (4 * H,), kb)
    b_hh = unif(ks[3], (4 * H,), kb)

    # Permute gate units (i, f, g, o) -> (i, f, o, g): sigmoid on one 3H slab,
    # tanh on one H slab inside the kernel.
    perm = jnp.concatenate([jnp.arange(0, H), jnp.arange(H, 2 * H),
                            jnp.arange(3 * H, 4 * H), jnp.arange(2 * H, 3 * H)])
    w_ih_t = w_ih_t[perm]
    w_hh_t = w_hh_t[perm]
    b_lstm = (b_ih + b_hh)[perm]

    # fc layers (PyTorch layout: (out, in)); k = 1/sqrt(in)
    def linear(kw, kbias, fan_in, fan_out):
        bound = 1.0 / jnp.sqrt(jnp.float32(fan_in))
        w = unif(kw, (fan_out, fan_in), bound)
        b = unif(kbias, (fan_out,), bound)
        return w, b

    w1_t, b1 = linear(ks[4], ks[5], H, last_hidden)
    w2_t, b2 = linear(ks[6], ks[7], last_hidden, last_hidden)
    w3_t, b3 = linear(ks[8], ks[9], last_hidden, last_hidden)
    wv_t, bv = linear(ks[10], ks[11], last_hidden, A)

    # NormedLinear: weight *= scale / ||row||_2   (scale = 0.1, dim=1) at init time.
    row_norm = jnp.sqrt(jnp.sum(wv_t * wv_t, axis=1, keepdims=True))
    wv_t = wv_t * (0.1 / row_norm)

    return {
        "w_ih": jnp.transpose(w_ih_t),                 # (F, 4H)  cols = (i,f,o,g)
        "w_hh": jnp.transpose(w_hh_t),                 # (H, 4H)  cols = (i,f,o,g)
        "b_lstm": b_lstm.reshape(1, 4 * H),            # (1, 4H)
        "w1": jnp.transpose(w1_t), "b1": b1.reshape(1, -1),
        "w2": jnp.transpose(w2_t), "b2": b2.reshape(1, -1),
        "w3": jnp.transpose(w3_t), "b3": b3.reshape(1, -1),
        "wv": jnp.transpose(wv_t), "bv": bv.reshape(1, -1),
    }


if __name__ == "__main__":
    # Small config consistent with the module's args.
    B, T = 2, 8            # batch, sequence length
    n_features = 4
    n_hidden = 32
    n_action = 1

    key = jax.random.PRNGKey(0)
    k_x, k_p = jax.random.split(key)
    x = jax.random.normal(k_x, (B, T, n_features), jnp.float32)
    params = init_params(k_p, n_features, n_hidden, n_action)

    # mode='batch'
    value_batch = critic_forward(x, params)
    jax.block_until_ready(value_batch)
    assert value_batch.shape == (B, n_action), value_batch.shape

    # mode='forward' (single flattened sequence)
    value_single = critic_forward_single(x[0], params)
    jax.block_until_ready(value_single)
    assert value_single.shape == (n_action,), value_single.shape

    print("KERNEL_OK")
</pallas_src>

<mosaic_0001>
module attributes {stable_mosaic.version = 11 : i64} {
  func.func @critic_kernel(%arg0: i32, %arg1: memref<8x8x4xf32, #tpu.memory_space<vmem>>, %arg2: memref<4x128xf32, #tpu.memory_space<vmem>>, %arg3: memref<32x128xf32, #tpu.memory_space<vmem>>, %arg4: memref<1x128xf32, #tpu.memory_space<vmem>>, %arg5: memref<32x64xf32, #tpu.memory_space<vmem>>, %arg6: memref<1x64xf32, #tpu.memory_space<vmem>>, %arg7: memref<64x64xf32, #tpu.memory_space<vmem>>, %arg8: memref<1x64xf32, #tpu.memory_space<vmem>>, %arg9: memref<64x64xf32, #tpu.memory_space<vmem>>, %arg10: memref<1x64xf32, #tpu.memory_space<vmem>>, %arg11: memref<64x1xf32, #tpu.memory_space<vmem>>, %arg12: memref<1x1xf32, #tpu.memory_space<vmem>>, %arg13: memref<8x1xf32, #tpu.memory_space<vmem>>) attributes {dimension_semantics = [#tpu.dimension_semantics<parallel>], iteration_bounds = array<i64: 1>, scalar_prefetch = 0 : i64, scratch_operands = 0 : i64, tpu.core_type = #tpu.core_type<tc>, window_params = [{transform_indices = @transform_0, window_bounds = array<i64: 8, 8, 4>}, {pipeline_mode = #tpu.pipeline_mode<synchronous>, transform_indices = @transform_1, window_bounds = array<i64: 4, 128>}, {pipeline_mode = #tpu.pipeline_mode<synchronous>, transform_indices = @transform_2, window_bounds = array<i64: 32, 128>}, {pipeline_mode = #tpu.pipeline_mode<synchronous>, transform_indices = @transform_3, window_bounds = array<i64: 1, 128>}, {pipeline_mode = #tpu.pipeline_mode<synchronous>, transform_indices = @transform_4, window_bounds = array<i64: 32, 64>}, {pipeline_mode = #tpu.pipeline_mode<synchronous>, transform_indices = @transform_5, window_bounds = array<i64: 1, 64>}, {pipeline_mode = #tpu.pipeline_mode<synchronous>, transform_indices = @transform_6, window_bounds = array<i64: 64, 64>}, {pipeline_mode = #tpu.pipeline_mode<synchronous>, transform_indices = @transform_7, window_bounds = array<i64: 1, 64>}, {pipeline_mode = #tpu.pipeline_mode<synchronous>, transform_indices = @transform_8, window_bounds = array<i64: 64, 64>}, {pipeline_mode = #tpu.pipeline_mode<synchronous>, transform_indices = @transform_9, window_bounds = array<i64: 1, 64>}, {pipeline_mode = #tpu.pipeline_mode<synchronous>, transform_indices = @transform_10, window_bounds = array<i64: 64, 1>}, {pipeline_mode = #tpu.pipeline_mode<synchronous>, transform_indices = @transform_11, window_bounds = array<i64: 1, 1>}, {transform_indices = @transform_12, window_bounds = array<i64: 8, 1>}]} {
    %c0 = arith.constant 0 : index
    %c0_0 = arith.constant 0 : index
    %0 = vector.load %arg3[%c0, %c0_0] : memref<32x128xf32, #tpu.memory_space<vmem>>, vector<32x128xf32>
    %c0_1 = arith.constant 0 : index
    %c0_2 = arith.constant 0 : index
    %c0_3 = arith.constant 0 : index
    %1 = vector.load %arg1[%c0_1, %c0_2, %c0_3] : memref<8x8x4xf32, #tpu.memory_space<vmem>>, vector<8x8x4xf32>
    %2 = vector.shape_cast %1 : vector<8x8x4xf32> to vector<64x4xf32>
    %c0_4 = arith.constant 0 : index
    %c0_5 = arith.constant 0 : index
    %3 = vector.load %arg2[%c0_4, %c0_5] : memref<4x128xf32, #tpu.memory_space<vmem>>, vector<4x128xf32>
    %cst = arith.constant dense<0.000000e+00> : vector<64x128xf32>
    %4 = tpu.matmul %2, %3, %cst {dimension_numbers = #tpu.dot_dimension_numbers<[1], [0], [0], [1], [0, 0, 1, 1], [], []>} : vector<64x4xf32>, vector<4x128xf32>, vector<64x128xf32> -> vector<64x128xf32>
    %c0_6 = arith.constant 0 : index
    %c0_7 = arith.constant 0 : index
    %5 = vector.load %arg4[%c0_6, %c0_7] : memref<1x128xf32, #tpu.memory_space<vmem>>, vector<1x128xf32>
    %6 = vector.broadcast %5 : vector<1x128xf32> to vector<64x128xf32>
    %7 = arith.addf %4, %6 : vector<64x128xf32>
    %8 = vector.shape_cast %7 : vector<64x128xf32> to vector<8x8x128xf32>
    %9 = vector.extract_strided_slice %8 {offsets = [0, 0, 0], sizes = [1, 8, 128], strides = [1, 1, 1]} : vector<8x8x128xf32> to vector<1x8x128xf32>
    %10 = vector.shape_cast %9 : vector<1x8x128xf32> to vector<8x128xf32>
    %11 = vector.extract_strided_slice %10 {offsets = [0, 0], sizes = [8, 96], strides = [1, 1]} : vector<8x128xf32> to vector<8x96xf32>
    %12 = arith.negf %11 : vector<8x96xf32>
    %13 = math.exp %12 : vector<8x96xf32>
    %cst_8 = arith.constant 1.000000e+00 : f32
    %14 = vector.broadcast %cst_8 : f32 to vector<8x96xf32>
    %15 = arith.addf %14, %13 : vector<8x96xf32>
    %16 = arith.divf %14, %15 : vector<8x96xf32>
    %17 = vector.extract_strided_slice %10 {offsets = [0, 96], sizes = [8, 32], strides = [1, 1]} : vector<8x128xf32> to vector<8x32xf32>
    %18 = math.tanh %17 : vector<8x32xf32>
    %19 = vector.extract_strided_slice %16 {offsets = [0, 0], sizes = [8, 32], strides = [1, 1]} : vector<8x96xf32> to vector<8x32xf32>
    %20 = arith.mulf %19, %18 : vector<8x32xf32>
    %21 = vector.extract_strided_slice %16 {offsets = [0, 64], sizes = [8, 32], strides = [1, 1]} : vector<8x96xf32> to vector<8x32xf32>
    %22 = math.tanh %20 : vector<8x32xf32>
    %23 = arith.mulf %21, %22 : vector<8x32xf32>
    %24 = vector.extract_strided_slice %8 {offsets = [1, 0, 0], sizes = [1, 8, 128], strides = [1, 1, 1]} : vector<8x8x128xf32> to vector<1x8x128xf32>
    %25 = vector.shape_cast %24 : vector<1x8x128xf32> to vector<8x128xf32>
    %cst_9 = arith.constant dense<0.000000e+00> : vector<8x128xf32>
    %26 = tpu.matmul %23, %0, %cst_9 {dimension_numbers = #tpu.dot_dimension_numbers<[1], [0], [0], [1], [0, 0, 1, 1], [], []>} : vector<8x32xf32>, vector<32x128xf32>, vector<8x128xf32> -> vector<8x128xf32>
    %27 = arith.addf %25, %26 : vector<8x128xf32>
    %28 = vector.extract_strided_slice %27 {offsets = [0, 0], sizes = [8, 96], strides = [1, 1]} : vector<8x128xf32> to vector<8x96xf32>
    %29 = arith.negf %28 : vector<8x96xf32>
    %30 = math.exp %29 : vector<8x96xf32>
    %cst_10 = arith.constant 1.000000e+00 : f32
    %31 = vector.broadcast %cst_10 : f32 to vector<8x96xf32>
    %32 = arith.addf %31, %30 : vector<8x96xf32>
    %33 = arith.divf %31, %32 : vector<8x96xf32>
    %34 = vector.extract_strided_slice %27 {offsets = [0, 96], sizes = [8, 32], strides = [1, 1]} : vector<8x128xf32> to vector<8x32xf32>
    %35 = math.tanh %34 : vector<8x32xf32>
    %36 = vector.extract_strided_slice %33 {offsets = [0, 32], sizes = [8, 32], strides = [1, 1]} : vector<8x96xf32> to vector<8x32xf32>
    %37 = arith.mulf %36, %20 : vector<8x32xf32>
    %38 = vector.extract_strided_slice %33 {offsets = [0, 0], sizes = [8, 32], strides = [1, 1]} : vector<8x96xf32> to vector<8x32xf32>
    %39 = arith.mulf %38, %35 : vector<8x32xf32>
    %40 = arith.addf %37, %39 : vector<8x32xf32>
    %41 = vector.extract_strided_slice %33 {offsets = [0, 64], sizes = [8, 32], strides = [1, 1]} : vector<8x96xf32> to vector<8x32xf32>
    %42 = math.tanh %40 : vector<8x32xf32>
    %43 = arith.mulf %41, %42 : vector<8x32xf32>
    %44 = vector.extract_strided_slice %8 {offsets = [2, 0, 0], sizes = [1, 8, 128], strides = [1, 1, 1]} : vector<8x8x128xf32> to vector<1x8x128xf32>
    %45 = vector.shape_cast %44 : vector<1x8x128xf32> to vector<8x128xf32>
    %cst_11 = arith.constant dense<0.000000e+00> : vector<8x128xf32>
    %46 = tpu.matmul %43, %0, %cst_11 {dimension_numbers = #tpu.dot_dimension_numbers<[1], [0], [0], [1], [0, 0, 1, 1], [], []>} : vector<8x32xf32>, vector<32x128xf32>, vector<8x128xf32> -> vector<8x128xf32>
    %47 = arith.addf %45, %46 : vector<8x128xf32>
    %48 = vector.extract_strided_slice %47 {offsets = [0, 0], sizes = [8, 96], strides = [1, 1]} : vector<8x128xf32> to vector<8x96xf32>
    %49 = arith.negf %48 : vector<8x96xf32>
    %50 = math.exp %49 : vector<8x96xf32>
    %cst_12 = arith.constant 1.000000e+00 : f32
    %51 = vector.broadcast %cst_12 : f32 to vector<8x96xf32>
    %52 = arith.addf %51, %50 : vector<8x96xf32>
    %53 = arith.divf %51, %52 : vector<8x96xf32>
    %54 = vector.extract_strided_slice %47 {offsets = [0, 96], sizes = [8, 32], strides = [1, 1]} : vector<8x128xf32> to vector<8x32xf32>
    %55 = math.tanh %54 : vector<8x32xf32>
    %56 = vector.extract_strided_slice %53 {offsets = [0, 32], sizes = [8, 32], strides = [1, 1]} : vector<8x96xf32> to vector<8x32xf32>
    %57 = arith.mulf %56, %40 : vector<8x32xf32>
    %58 = vector.extract_strided_slice %53 {offsets = [0, 0], sizes = [8, 32], strides = [1, 1]} : vector<8x96xf32> to vector<8x32xf32>
    %59 = arith.mulf %58, %55 : vector<8x32xf32>
    %60 = arith.addf %57, %59 : vector<8x32xf32>
    %61 = vector.extract_strided_slice %53 {offsets = [0, 64], sizes = [8, 32], strides = [1, 1]} : vector<8x96xf32> to vector<8x32xf32>
    %62 = math.tanh %60 : vector<8x32xf32>
    %63 = arith.mulf %61, %62 : vector<8x32xf32>
    %64 = vector.extract_strided_slice %8 {offsets = [3, 0, 0], sizes = [1, 8, 128], strides = [1, 1, 1]} : vector<8x8x128xf32> to vector<1x8x128xf32>
    %65 = vector.shape_cast %64 : vector<1x8x128xf32> to vector<8x128xf32>
    %cst_13 = arith.constant dense<0.000000e+00> : vector<8x128xf32>
    %66 = tpu.matmul %63, %0, %cst_13 {dimension_numbers = #tpu.dot_dimension_numbers<[1], [0], [0], [1], [0, 0, 1, 1], [], []>} : vector<8x32xf32>, vector<32x128xf32>, vector<8x128xf32> -> vector<8x128xf32>
    %67 = arith.addf %65, %66 : vector<8x128xf32>
    %68 = vector.extract_strided_slice %67 {offsets = [0, 0], sizes = [8, 96], strides = [1, 1]} : vector<8x128xf32> to vector<8x96xf32>
    %69 = arith.negf %68 : vector<8x96xf32>
    %70 = math.exp %69 : vector<8x96xf32>
    %cst_14 = arith.constant 1.000000e+00 : f32
    %71 = vector.broadcast %cst_14 : f32 to vector<8x96xf32>
    %72 = arith.addf %71, %70 : vector<8x96xf32>
    %73 = arith.divf %71, %72 : vector<8x96xf32>
    %74 = vector.extract_strided_slice %67 {offsets = [0, 96], sizes = [8, 32], strides = [1, 1]} : vector<8x128xf32> to vector<8x32xf32>
    %75 = math.tanh %74 : vector<8x32xf32>
    %76 = vector.extract_strided_slice %73 {offsets = [0, 32], sizes = [8, 32], strides = [1, 1]} : vector<8x96xf32> to vector<8x32xf32>
    %77 = arith.mulf %76, %60 : vector<8x32xf32>
    %78 = vector.extract_strided_slice %73 {offsets = [0, 0], sizes = [8, 32], strides = [1, 1]} : vector<8x96xf32> to vector<8x32xf32>
    %79 = arith.mulf %78, %75 : vector<8x32xf32>
    %80 = arith.addf %77, %79 : vector<8x32xf32>
    %81 = vector.extract_strided_slice %73 {offsets = [0, 64], sizes = [8, 32], strides = [1, 1]} : vector<8x96xf32> to vector<8x32xf32>
    %82 = math.tanh %80 : vector<8x32xf32>
    %83 = arith.mulf %81, %82 : vector<8x32xf32>
    %84 = vector.extract_strided_slice %8 {offsets = [4, 0, 0], sizes = [1, 8, 128], strides = [1, 1, 1]} : vector<8x8x128xf32> to vector<1x8x128xf32>
    %85 = vector.shape_cast %84 : vector<1x8x128xf32> to vector<8x128xf32>
    %cst_15 = arith.constant dense<0.000000e+00> : vector<8x128xf32>
    %86 = tpu.matmul %83, %0, %cst_15 {dimension_numbers = #tpu.dot_dimension_numbers<[1], [0], [0], [1], [0, 0, 1, 1], [], []>} : vector<8x32xf32>, vector<32x128xf32>, vector<8x128xf32> -> vector<8x128xf32>
    %87 = arith.addf %85, %86 : vector<8x128xf32>
    %88 = vector.extract_strided_slice %87 {offsets = [0, 0], sizes = [8, 96], strides = [1, 1]} : vector<8x128xf32> to vector<8x96xf32>
    %89 = arith.negf %88 : vector<8x96xf32>
    %90 = math.exp %89 : vector<8x96xf32>
    %cst_16 = arith.constant 1.000000e+00 : f32
    %91 = vector.broadcast %cst_16 : f32 to vector<8x96xf32>
    %92 = arith.addf %91, %90 : vector<8x96xf32>
    %93 = arith.divf %91, %92 : vector<8x96xf32>
    %94 = vector.extract_strided_slice %87 {offsets = [0, 96], sizes = [8, 32], strides = [1, 1]} : vector<8x128xf32> to vector<8x32xf32>
    %95 = math.tanh %94 : vector<8x32xf32>
    %96 = vector.extract_strided_slice %93 {offsets = [0, 32], sizes = [8, 32], strides = [1, 1]} : vector<8x96xf32> to vector<8x32xf32>
    %97 = arith.mulf %96, %80 : vector<8x32xf32>
    %98 = vector.extract_strided_slice %93 {offsets = [0, 0], sizes = [8, 32], strides = [1, 1]} : vector<8x96xf32> to vector<8x32xf32>
    %99 = arith.mulf %98, %95 : vector<8x32xf32>
    %100 = arith.addf %97, %99 : vector<8x32xf32>
    %101 = vector.extract_strided_slice %93 {offsets = [0, 64], sizes = [8, 32], strides = [1, 1]} : vector<8x96xf32> to vector<8x32xf32>
    %102 = math.tanh %100 : vector<8x32xf32>
    %103 = arith.mulf %101, %102 : vector<8x32xf32>
    %104 = vector.extract_strided_slice %8 {offsets = [5, 0, 0], sizes = [1, 8, 128], strides = [1, 1, 1]} : vector<8x8x128xf32> to vector<1x8x128xf32>
    %105 = vector.shape_cast %104 : vector<1x8x128xf32> to vector<8x128xf32>
    %cst_17 = arith.constant dense<0.000000e+00> : vector<8x128xf32>
    %106 = tpu.matmul %103, %0, %cst_17 {dimension_numbers = #tpu.dot_dimension_numbers<[1], [0], [0], [1], [0, 0, 1, 1], [], []>} : vector<8x32xf32>, vector<32x128xf32>, vector<8x128xf32> -> vector<8x128xf32>
    %107 = arith.addf %105, %106 : vector<8x128xf32>
    %108 = vector.extract_strided_slice %107 {offsets = [0, 0], sizes = [8, 96], strides = [1, 1]} : vector<8x128xf32> to vector<8x96xf32>
    %109 = arith.negf %108 : vector<8x96xf32>
    %110 = math.exp %109 : vector<8x96xf32>
    %cst_18 = arith.constant 1.000000e+00 : f32
    %111 = vector.broadcast %cst_18 : f32 to vector<8x96xf32>
    %112 = arith.addf %111, %110 : vector<8x96xf32>
    %113 = arith.divf %111, %112 : vector<8x96xf32>
    %114 = vector.extract_strided_slice %107 {offsets = [0, 96], sizes = [8, 32], strides = [1, 1]} : vector<8x128xf32> to vector<8x32xf32>
    %115 = math.tanh %114 : vector<8x32xf32>
    %116 = vector.extract_strided_slice %113 {offsets = [0, 32], sizes = [8, 32], strides = [1, 1]} : vector<8x96xf32> to vector<8x32xf32>
    %117 = arith.mulf %116, %100 : vector<8x32xf32>
    %118 = vector.extract_strided_slice %113 {offsets = [0, 0], sizes = [8, 32], strides = [1, 1]} : vector<8x96xf32> to vector<8x32xf32>
    %119 = arith.mulf %118, %115 : vector<8x32xf32>
    %120 = arith.addf %117, %119 : vector<8x32xf32>
    %121 = vector.extract_strided_slice %113 {offsets = [0, 64], sizes = [8, 32], strides = [1, 1]} : vector<8x96xf32> to vector<8x32xf32>
    %122 = math.tanh %120 : vector<8x32xf32>
    %123 = arith.mulf %121, %122 : vector<8x32xf32>
    %124 = vector.extract_strided_slice %8 {offsets = [6, 0, 0], sizes = [1, 8, 128], strides = [1, 1, 1]} : vector<8x8x128xf32> to vector<1x8x128xf32>
    %125 = vector.shape_cast %124 : vector<1x8x128xf32> to vector<8x128xf32>
    %cst_19 = arith.constant dense<0.000000e+00> : vector<8x128xf32>
    %126 = tpu.matmul %123, %0, %cst_19 {dimension_numbers = #tpu.dot_dimension_numbers<[1], [0], [0], [1], [0, 0, 1, 1], [], []>} : vector<8x32xf32>, vector<32x128xf32>, vector<8x128xf32> -> vector<8x128xf32>
    %127 = arith.addf %125, %126 : vector<8x128xf32>
    %128 = vector.extract_strided_slice %127 {offsets = [0, 0], sizes = [8, 96], strides = [1, 1]} : vector<8x128xf32> to vector<8x96xf32>
    %129 = arith.negf %128 : vector<8x96xf32>
    %130 = math.exp %129 : vector<8x96xf32>
    %cst_20 = arith.constant 1.000000e+00 : f32
    %131 = vector.broadcast %cst_20 : f32 to vector<8x96xf32>
    %132 = arith.addf %131, %130 : vector<8x96xf32>
    %133 = arith.divf %131, %132 : vector<8x96xf32>
    %134 = vector.extract_strided_slice %127 {offsets = [0, 96], sizes = [8, 32], strides = [1, 1]} : vector<8x128xf32> to vector<8x32xf32>
    %135 = math.tanh %134 : vector<8x32xf32>
    %136 = vector.extract_strided_slice %133 {offsets = [0, 32], sizes = [8, 32], strides = [1, 1]} : vector<8x96xf32> to vector<8x32xf32>
    %137 = arith.mulf %136, %120 : vector<8x32xf32>
    %138 = vector.extract_strided_slice %133 {offsets = [0, 0], sizes = [8, 32], strides = [1, 1]} : vector<8x96xf32> to vector<8x32xf32>
    %139 = arith.mulf %138, %135 : vector<8x32xf32>
    %140 = arith.addf %137, %139 : vector<8x32xf32>
    %141 = vector.extract_strided_slice %133 {offsets = [0, 64], sizes = [8, 32], strides = [1, 1]} : vector<8x96xf32> to vector<8x32xf32>
    %142 = math.tanh %140 : vector<8x32xf32>
    %143 = arith.mulf %141, %142 : vector<8x32xf32>
    %144 = vector.extract_strided_slice %8 {offsets = [7, 0, 0], sizes = [1, 8, 128], strides = [1, 1, 1]} : vector<8x8x128xf32> to vector<1x8x128xf32>
    %145 = vector.shape_cast %144 : vector<1x8x128xf32> to vector<8x128xf32>
    %cst_21 = arith.constant dense<0.000000e+00> : vector<8x128xf32>
    %146 = tpu.matmul %143, %0, %cst_21 {dimension_numbers = #tpu.dot_dimension_numbers<[1], [0], [0], [1], [0, 0, 1, 1], [], []>} : vector<8x32xf32>, vector<32x128xf32>, vector<8x128xf32> -> vector<8x128xf32>
    %147 = arith.addf %145, %146 : vector<8x128xf32>
    %148 = vector.extract_strided_slice %147 {offsets = [0, 0], sizes = [8, 96], strides = [1, 1]} : vector<8x128xf32> to vector<8x96xf32>
    %149 = arith.negf %148 : vector<8x96xf32>
    %150 = math.exp %149 : vector<8x96xf32>
    %cst_22 = arith.constant 1.000000e+00 : f32
    %151 = vector.broadcast %cst_22 : f32 to vector<8x96xf32>
    %152 = arith.addf %151, %150 : vector<8x96xf32>
    %153 = arith.divf %151, %152 : vector<8x96xf32>
    %154 = vector.extract_strided_slice %147 {offsets = [0, 96], sizes = [8, 32], strides = [1, 1]} : vector<8x128xf32> to vector<8x32xf32>
    %155 = math.tanh %154 : vector<8x32xf32>
    %156 = vector.extract_strided_slice %153 {offsets = [0, 32], sizes = [8, 32], strides = [1, 1]} : vector<8x96xf32> to vector<8x32xf32>
    %157 = arith.mulf %156, %140 : vector<8x32xf32>
    %158 = vector.extract_strided_slice %153 {offsets = [0, 0], sizes = [8, 32], strides = [1, 1]} : vector<8x96xf32> to vector<8x32xf32>
    %159 = arith.mulf %158, %155 : vector<8x32xf32>
    %160 = arith.addf %157, %159 : vector<8x32xf32>
    %161 = vector.extract_strided_slice %153 {offsets = [0, 64], sizes = [8, 32], strides = [1, 1]} : vector<8x96xf32> to vector<8x32xf32>
    %162 = math.tanh %160 : vector<8x32xf32>
    %163 = arith.mulf %161, %162 : vector<8x32xf32>
    %c0_23 = arith.constant 0 : index
    %c0_24 = arith.constant 0 : index
    %164 = vector.load %arg5[%c0_23, %c0_24] : memref<32x64xf32, #tpu.memory_space<vmem>>, vector<32x64xf32>
    %cst_25 = arith.constant dense<0.000000e+00> : vector<8x64xf32>
    %165 = tpu.matmul %163, %164, %cst_25 {dimension_numbers = #tpu.dot_dimension_numbers<[1], [0], [0], [1], [0, 0, 1, 1], [], []>} : vector<8x32xf32>, vector<32x64xf32>, vector<8x64xf32> -> vector<8x64xf32>
    %c0_26 = arith.constant 0 : index
    %c0_27 = arith.constant 0 : index
    %166 = vector.load %arg6[%c0_26, %c0_27] : memref<1x64xf32, #tpu.memory_space<vmem>>, vector<1x64xf32>
    %167 = vector.broadcast %166 : vector<1x64xf32> to vector<8x64xf32>
    %168 = arith.addf %165, %167 : vector<8x64xf32>
    %cst_28 = arith.constant 0.000000e+00 : f32
    %169 = vector.broadcast %cst_28 : f32 to vector<8x64xf32>
    %170 = arith.maximumf %168, %169 : vector<8x64xf32>
    %c0_29 = arith.constant 0 : index
    %c0_30 = arith.constant 0 : index
    %171 = vector.load %arg7[%c0_29, %c0_30] : memref<64x64xf32, #tpu.memory_space<vmem>>, vector<64x64xf32>
    %cst_31 = arith.constant dense<0.000000e+00> : vector<8x64xf32>
    %172 = tpu.matmul %170, %171, %cst_31 {dimension_numbers = #tpu.dot_dimension_numbers<[1], [0], [0], [1], [0, 0, 1, 1], [], []>} : vector<8x64xf32>, vector<64x64xf32>, vector<8x64xf32> -> vector<8x64xf32>
    %c0_32 = arith.constant 0 : index
    %c0_33 = arith.constant 0 : index
    %173 = vector.load %arg8[%c0_32, %c0_33] : memref<1x64xf32, #tpu.memory_space<vmem>>, vector<1x64xf32>
    %174 = vector.broadcast %173 : vector<1x64xf32> to vector<8x64xf32>
    %175 = arith.addf %172, %174 : vector<8x64xf32>
    %cst_34 = arith.constant 0.000000e+00 : f32
    %176 = vector.broadcast %cst_34 : f32 to vector<8x64xf32>
    %177 = arith.maximumf %175, %176 : vector<8x64xf32>
    %c0_35 = arith.constant 0 : index
    %c0_36 = arith.constant 0 : index
    %178 = vector.load %arg9[%c0_35, %c0_36] : memref<64x64xf32, #tpu.memory_space<vmem>>, vector<64x64xf32>
    %cst_37 = arith.constant dense<0.000000e+00> : vector<8x64xf32>
    %179 = tpu.matmul %177, %178, %cst_37 {dimension_numbers = #tpu.dot_dimension_numbers<[1], [0], [0], [1], [0, 0, 1, 1], [], []>} : vector<8x64xf32>, vector<64x64xf32>, vector<8x64xf32> -> vector<8x64xf32>
    %c0_38 = arith.constant 0 : index
    %c0_39 = arith.constant 0 : index
    %180 = vector.load %arg10[%c0_38, %c0_39] : memref<1x64xf32, #tpu.memory_space<vmem>>, vector<1x64xf32>
    %181 = vector.broadcast %180 : vector<1x64xf32> to vector<8x64xf32>
    %182 = arith.addf %179, %181 : vector<8x64xf32>
    %cst_40 = arith.constant 0.000000e+00 : f32
    %183 = vector.broadcast %cst_40 : f32 to vector<8x64xf32>
    %184 = arith.maximumf %182, %183 : vector<8x64xf32>
    %c0_41 = arith.constant 0 : index
    %c0_42 = arith.constant 0 : index
    %185 = vector.load %arg11[%c0_41, %c0_42] : memref<64x1xf32, #tpu.memory_space<vmem>>, vector<64x1xf32>
    %cst_43 = arith.constant dense<0.000000e+00> : vector<8x1xf32>
    %186 = tpu.matmul %184, %185, %cst_43 {dimension_numbers = #tpu.dot_dimension_numbers<[1], [0], [0], [1], [0, 0, 1, 1], [], []>} : vector<8x64xf32>, vector<64x1xf32>, vector<8x1xf32> -> vector<8x1xf32>
    %c0_44 = arith.constant 0 : index
    %c0_45 = arith.constant 0 : index
    %187 = vector.load %arg12[%c0_44, %c0_45] : memref<1x1xf32, #tpu.memory_space<vmem>>, vector<1x1xf32>
    %188 = vector.broadcast %187 : vector<1x1xf32> to vector<8x1xf32>
    %189 = arith.addf %186, %188 : vector<8x1xf32>
    %c0_46 = arith.constant 0 : index
    %c0_47 = arith.constant 0 : index
    %190 = vector.load %arg13[%c0_46, %c0_47] : memref<8x1xf32, #tpu.memory_space<vmem>>, vector<8x1xf32>
    tpu.vector_store %arg13[%c0_46, %c0_47], %189 {strides = array<i32>} : memref<8x1xf32, #tpu.memory_space<vmem>>, vector<8x1xf32>,
    return
  }
  func.func @transform_0(%arg0: i32) -> (i32, i32, i32) {
    %c0_i32 = arith.constant 0 : i32
    %c0_i32_0 = arith.constant 0 : i32
    %c0_i32_1 = arith.constant 0 : i32
    return %c0_i32, %arg0, %c0_i32_0 : i32, i32, i32
  }
  func.func @transform_1(%arg0: i32) -> (i32, i32) {
    %c0_i32 = arith.constant 0 : i32
    %c0_i32_0 = arith.constant 0 : i32
    %c0_i32_1 = arith.constant 0 : i32
    return %c0_i32, %c0_i32_0 : i32, i32
  }
  func.func @transform_2(%arg0: i32) -> (i32, i32) {
    %c0_i32 = arith.constant 0 : i32
    %c0_i32_0 = arith.constant 0 : i32
    %c0_i32_1 = arith.constant 0 : i32
    return %c0_i32, %c0_i32_0 : i32, i32
  }
  func.func @transform_3(%arg0: i32) -> (i32, i32) {
    %c0_i32 = arith.constant 0 : i32
    %c0_i32_0 = arith.constant 0 : i32
    %c0_i32_1 = arith.constant 0 : i32
    return %c0_i32, %c0_i32_0 : i32, i32
  }
  func.func @transform_4(%arg0: i32) -> (i32, i32) {
    %c0_i32 = arith.constant 0 : i32
    %c0_i32_0 = arith.constant 0 : i32
    %c0_i32_1 = arith.constant 0 : i32
    return %c0_i32, %c0_i32_0 : i32, i32
  }
  func.func @transform_5(%arg0: i32) -> (i32, i32) {
    %c0_i32 = arith.constant 0 : i32
    %c0_i32_0 = arith.constant 0 : i32
    %c0_i32_1 = arith.constant 0 : i32
    return %c0_i32, %c0_i32_0 : i32, i32
  }
  func.func @transform_6(%arg0: i32) -> (i32, i32) {
    %c0_i32 = arith.constant 0 : i32
    %c0_i32_0 = arith.constant 0 : i32
    %c0_i32_1 = arith.constant 0 : i32
    return %c0_i32, %c0_i32_0 : i32, i32
  }
  func.func @transform_7(%arg0: i32) -> (i32, i32) {
    %c0_i32 = arith.constant 0 : i32
    %c0_i32_0 = arith.constant 0 : i32
    %c0_i32_1 = arith.constant 0 : i32
    return %c0_i32, %c0_i32_0 : i32, i32
  }
  func.func @transform_8(%arg0: i32) -> (i32, i32) {
    %c0_i32 = arith.constant 0 : i32
    %c0_i32_0 = arith.constant 0 : i32
    %c0_i32_1 = arith.constant 0 : i32
    return %c0_i32, %c0_i32_0 : i32, i32
  }
  func.func @transform_9(%arg0: i32) -> (i32, i32) {
    %c0_i32 = arith.constant 0 : i32
    %c0_i32_0 = arith.constant 0 : i32
    %c0_i32_1 = arith.constant 0 : i32
    return %c0_i32, %c0_i32_0 : i32, i32
  }
  func.func @transform_10(%arg0: i32) -> (i32, i32) {
    %c0_i32 = arith.constant 0 : i32
    %c0_i32_0 = arith.constant 0 : i32
    %c0_i32_1 = arith.constant 0 : i32
    return %c0_i32, %c0_i32_0 : i32, i32
  }
  func.func @transform_11(%arg0: i32) -> (i32, i32) {
    %c0_i32 = arith.constant 0 : i32
    %c0_i32_0 = arith.constant 0 : i32
    %c0_i32_1 = arith.constant 0 : i32
    return %c0_i32, %c0_i32_0 : i32, i32
  }
  func.func @transform_12(%arg0: i32) -> (i32, i32) {
    %c0_i32 = arith.constant 0 : i32
    %c0_i32_0 = arith.constant 0 : i32
    return %arg0, %c0_i32 : i32, i32
  }
}

</mosaic_0001>

<bundles_post_ra>
// kernel: critic_forward.1
= control target key start
LH: loop header
LB: loop body
LE: loop exit
PB: predicated region body
PF: predicated region fallthrough
CT: control target
= control target key end

     0   :  { %s2052_s0 = inlined_call_operand.vmem [shape: f32[8,8,4], index: 0, kind: input, shape index: {}]   ;;  %s2053_s1 = inlined_call_operand.vmem [shape: f32[4,128], index: 1, kind: input, shape index: {}]   ;;  %s2054_s2 = inlined_call_operand.vmem [shape: f32[32,128], index: 2, kind: input, shape index: {}]   ;;  %s2055_s3 = inlined_call_operand.vmem [shape: f32[1,128], index: 3, kind: input, shape index: {}]   ;;  %s2056_s4 = inlined_call_operand.hbm [shape: f32[32,64], index: 4, kind: input, shape index: {}]   ;;  %s2057_s5 = inlined_call_operand.vmem [shape: f32[1,64], index: 5, kind: input, shape index: {}]   ;;  %s2058_s6 = inlined_call_operand.vmem [shape: f32[64,64], index: 6, kind: input, shape index: {}]   ;;  %s2059_s7 = inlined_call_operand.vmem [shape: f32[1,64], index: 7, kind: input, shape index: {}]   ;;  %s2060_s8 = inlined_call_operand.vmem [shape: f32[64,64], index: 8, kind: input, shape index: {}]   ;;  %s2061_s9 = inlined_call_operand.vmem [shape: f32[1,64], index: 9, kind: input, shape index: {}]   ;;  %s2062_s10 = inlined_call_operand.vmem [shape: f32[64,1], index: 10, kind: input, shape index: {}]   ;;  %s2063_s11 = inlined_call_operand.<no memory space> [shape: f32[1,1], index: 11, kind: input, shape index: {}]   ;;  %s2064_s12 = inlined_call_operand.vmem [shape: f32[8,1], index: 12, kind: output, shape index: {}]  }
   0x1   :  { %v17_v0 = vstv %s2063_s11 }
   0x2   :  { %18 = vst [vmem:[#allocation2] sm:$0x1] %v17_v0 }
   0x3   :  { %19 = vsyncpa [#allocation4], 0  ;;  %s1658_s23 = smov [#allocation3]  }
   0x4   :  { %s33_s24 = sshll.u32 %s1658_s23, 4  ;;  %s34_s24 = int_to_ptr.vmem [resolvable:$true] %s33_s24 }
   0x5   :  { %s1644_s25 = scalar_lea.vmem %s34_s24, 512  ;;  %p1649_p1 = scmp.lt.s32.totalorder %s34_s24, %s34_s24 }
   0x6   :  { %p1645_p0 = scmp.ne.s32.totalorder %s34_s24, %s1644_s25  ;;  %p1650_p2 = scmp.lt.s32.totalorder %s1644_s25, %s1644_s25 }
   0x8   :  { %p1651_p3 = por %p1650_p2, %p1649_p1 }
   0xa   :  { %p1652_p4 = pnand %p1651_p3, %p1645_p0 }
   0xc   :  { %1655 = shalt.err (!%p1652_p4)
}
   0xd   :  { %s1659_s26 = smov 128   ;;  %s1660_s27 = smov 8  }
   0xe   :  { %39 = dma.hbm_to_vmem [thread:$0]  %s2056_s4, 512, %s34_s24, [#allocation4], %s1659_s26, %s1659_s26, %s1660_s27  }
   0xf   :  { %1656 = dma.done.wait [#allocation4], 512  }
  0x10   :  { %1657 = vsyncadd [#allocation4], 4294966784  ;;  %vm102_vm0 = vcmask 1043456   ;;  %vm77_vm1 = vcmask 31744   ;;  %v69_v1 = vld [vmem:[%s2053_s1] sm:$0xf] }
  0x11   :  { %v61_v2 = vld [vmem:[%s2052_s0] sm:$0xff]  ;;  %v62_v3 = vld [vmem:[%s2052_s0 + $0x8] sm:$0xff]  ;;  %1404 = vmatprep.subr.msk.mxu0 %vm102_vm0, %v69_v1  ;;  %1563 = vmatprep.subr.msk.mxu1 %vm102_vm0, %v69_v1  ;;  %s1661_s17 = smov 32   ;;  %v1765_v17 = vld [vmem:[%s2054_s2 + $0x18] sm:$0xff]  ;;  %v1662_v18 = vmov 0.0   ;;  %vm1663_vm2 = vmmov 0  }
  0x12   :  { %1406 = vmatprep.mubr.msk.f32.mxu0 %vm77_vm1, %v61_v2  ;;  %1405 = vmatpush3.msk.msra.mxu0 %vm102_vm0, %v69_v1  ;;  %v1752_v5 = vld [vmem:[%s2055_s3] ss:$0 sm:$0xff]  ;;  %v66_v16 = vld [vmem:[%s2052_s0 + $0x28] sm:$0xff]  ;;  %v67_v19 = vld [vmem:[%s2052_s0 + $0x30] sm:$0xff]  ;;  %s1664_s14 = smov 64   ;;  %vm232_vm3 = vcmask 261120  }
  0x13   :  { %1407 = vmatmul.mubr.msk.f32.vlgmr.msra.gmra.mxu0 %vm77_vm1, %v62_v3  ;;  %1564 = vmatpush3.msk.msra.mxu1 %vm102_vm0, %v69_v1  ;;  %v65_v15 = vld [vmem:[%s2052_s0 + $0x20] sm:$0xff]  ;;  %v1776_v20 = vld [vmem:[%s2054_s2 + $0x10] sm:$0xff]  ;;  %v68_v21 = vld [vmem:[%s2052_s0 + $0x38] sm:$0xff]  ;;  %vm1036_vm4 = vcmask 523264   ;;  %vm1288_vm5 = vcmask 7168  }
  0x14   :  { %1412 = vmatprep.mubr.msk.f32.mxu1 %vm77_vm1, %v65_v15  ;;  %1418 = vmatprep.subr.mxu1 %v1662_v18  ;;  %v1788_v22 = vld [vmem:[%s2054_s2 + $0x8] sm:$0xff]  ;;  %v1798_v23 = vld [vmem:[%s2054_s2] sm:$0xff]  ;;  %v63_v47 = vld [vmem:[%s2052_s0 + $0x10] sm:$0xff] }
  0x15   :  { %1413 = vmatmul.mubr.msk.f32.vlgmr.msra.gmra.mxu1 %vm77_vm1, %v66_v16  ;;  %1440 = vmatprep.subr.mxu0 %v1662_v18  ;;  %v64_v48 = vld [vmem:[%s2052_s0 + $0x18] sm:$0xff] }
  0x16   :  { %1419 = vmatpush3.msra.mxu1 %v1765_v17  ;;  %1415 = vmatprep.mubr.msk.f32.mxu1 %vm77_vm1, %v67_v19 }
  0x17   :  { %1420 = vmatprep.subr.mxu1 %v1662_v18  ;;  %1441 = vmatpush3.msra.mxu0 %v1765_v17 }
  0x18   :  { %1421 = vmatpush3.msra.mxu1 %v1776_v20  ;;  %1442 = vmatprep.subr.mxu0 %v1662_v18 }
  0x19   :  { %1416 = vmatmul.mubr.msk.f32.gmra.mxu1 %vm77_vm1, %v68_v21  ;;  %1422 = vmatprep.subr.mxu1 %v1662_v18 }
  0x1a   :  { %1423 = vmatpush3.msra.mxu1 %v1788_v22  ;;  %1426 = vmatprep.mubr.msk.f32.mxu1 %vm1663_vm2, %v1662_v18 }
  0x1b   :  { %1424 = vmatprep.subr.mxu1 %v1662_v18  ;;  %1443 = vmatpush3.msra.mxu0 %v1776_v20 }
  0x1c   :  { %1425 = vmatpush3.msra.mxu1 %v1798_v23  ;;  %1444 = vmatprep.subr.mxu0 %v1662_v18 }
  0x1d   :  { %1429 = vmatprep.subr.mxu1 %v1662_v18  ;;  %1445 = vmatpush3.msra.mxu0 %v1788_v22 }
  0x1e   :  { %1446 = vmatprep.subr.mxu0 %v1662_v18  ;;  %1409 = vmatprep.mubr.msk.f32.mxu0 %vm77_vm1, %v63_v47 }
  0x1f   :  { %1447 = vmatpush3.msra.mxu0 %v1798_v23 }
  0x20   :  { %1462 = vmatprep.subr.mxu0 %v1662_v18  ;;  %1410 = vmatmul.mubr.msk.f32.gmra.mxu0 %vm77_vm1, %v64_v48 }
  0x21   :  { %1448 = vmatprep.mubr.msk.f32.mxu0 %vm1663_vm2, %v1662_v18 }
  0xd3   :  { %v1747_v4 = vpop.f32.mrf.mxu0 }
  0xd4   :  { %v178_v32 = vadd.f32 %v1747_v4, %v1752_v5 }
  0xd5   :  { %v172_v6 = vpop.f32.mrf.mxu0  ;;  %v1826_v28 = vpop.f32.mrf.mxu1 }
  0xd6   :  { %v173_v7 = vadd.f32 %v1752_v5, %v172_v6 }
  0xd7   :  { %v1828_v29 = vpop.f32.mrf.mxu1 }
  0xd8   :  { %1572 = vtanh.f32 %v173_v7  ;;  %v1305_v9 = vmul.f32 -1.442695, %v173_v7 }
  0xd9   :  { %v1830_v30 = vpop.f32.mrf.mxu1 }
  0xda   :  { %1574 = vpow2.f32 %v1305_v9 }
  0xdb   :  { %v1832_v31 = vpop.f32.mrf.mxu1 }
  0xe0   :  { %v1411_v53 = vpop.f32.mrf.mxu0 }
  0xe2   :  { %v182_v54 = vpop.f32.mrf.mxu0 }
  0xe3   :  { %v183_v55 = vadd.f32 %v1752_v5, %v182_v54 }
  0xe5   :  { %v1573_v8 = vpop.eup %1572 }
  0xe6   :  { %219 = vrot.lane.b32.xlu0 %v1573_v8, %s1661_s17 }
  0xe7   :  { %v1575_v10 = vpop.eup %1574 }
  0xe8   :  { %v214_v11 = vadd.f32 1.0, %v1575_v10  ;;  %v188_v10 = vadd.f32 %v1411_v53, %v1752_v5 }
  0xea   :  { %1576 = vrcp.f32 %v214_v11 }
  0xf7   :  { %v1577_v12 = vpop.eup %1576 }
 0x158   :  { %v220_v13 = vpop.permute.xlu0 %219 }
 0x159   :  { %v222_v14 = vmul.f32 %v1577_v12, %v220_v13 }
 0x15b   :  { %1578 = vtanh.f32 %v222_v14 }
 0x168   :  { %v1579_v24 = vpop.eup %1578 }
 0x169   :  { %225 = vrot.lane.b32.xlu0 %v1579_v24, %s1664_s14 }
 0x16d   :  { %314 = vrot.lane.b32.xlu0 %v222_v14, %s1661_s17 }
 0x1db   :  { %v226_v25 = vpop.permute.xlu0 %225 }
 0x1dc   :  { %v228_v26 = vmul.f32 %v1577_v12, %v226_v25 }
 0x1de   :  { %230 = vrot.lane.b32.xlu1 %v228_v26, %s1664_s14 }
 0x1df   :  { %v315_v43 = vpop.permute.xlu0 %314 }
 0x250   :  { %v231_v27 = vpop.permute.xlu1 %230 }
 0x251   :  { %1427 = vmatmul.mubr.msk.f32.vlgmr.msra.gmra.mxu1 %vm232_vm3, %v231_v27 }
 0x252   :  { %1430 = vmatpush3.msra.mxu1 %v1765_v17  ;;  %1437 = vmatprep.mubr.msk.f32.mxu1 %vm1663_vm2, %v1662_v18 }
 0x253   :  { %1431 = vmatprep.subr.mxu1 %v1662_v18 }
 0x254   :  { %1432 = vmatpush3.msra.mxu1 %v1776_v20 }
 0x255   :  { %1433 = vmatprep.subr.mxu1 %v1662_v18 }
 0x256   :  { %1434 = vmatpush3.msra.mxu1 %v1788_v22 }
 0x257   :  { %1435 = vmatprep.subr.mxu1 %v1662_v18 }
 0x258   :  { %1436 = vmatpush3.msra.mxu1 %v1798_v23 }
 0x259   :  { %1451 = vmatprep.subr.mxu1 %v1662_v18 }
 0x311   :  { %v301_v33 = vpop.f32.mrf.mxu1 }
 0x312   :  { %v305_v34 = vadd.f32 %v301_v33, %v178_v32 }
 0x313   :  { %v1428_v35 = vpop.f32.mrf.mxu1 }
 0x314   :  { %1580 = vtanh.f32 %v305_v34  ;;  %v1307_v37 = vmul.f32 -1.442695, %v305_v34 }
 0x316   :  { %1582 = vpow2.f32 %v1307_v37  ;;  %v193_v37 = vadd.f32 %v1752_v5, %v1828_v29 }
 0x321   :  { %v1581_v36 = vpop.eup %1580 }
 0x322   :  { %319 = vrot.lane.b32.xlu1 %v1581_v36, %s1661_s17 }
 0x323   :  { %v1583_v38 = vpop.eup %1582 }
 0x324   :  { %v309_v39 = vadd.f32 1.0, %v1583_v38 }
 0x326   :  { %1584 = vrcp.f32 %v309_v39 }
 0x333   :  { %v1585_v40 = vpop.eup %1584 }
 0x334   :  { %v317_v44 = vmul.f32 %v1585_v40, %v315_v43 }
 0x394   :  { %v320_v41 = vpop.permute.xlu1 %319 }
 0x395   :  { %v322_v42 = vmul.f32 %v1585_v40, %v320_v41 }
 0x397   :  { %324 = vrot.lane.b32.xlu1 %v322_v42, %s1661_s17 }
 0x409   :  { %v325_v45 = vpop.permute.xlu1 %324 }
 0x40a   :  { %v327_v46 = vadd.f32 %v325_v45, %v317_v44 }
 0x40c   :  { %1586 = vtanh.f32 %v327_v46 }
 0x419   :  { %v1587_v49 = vpop.eup %1586 }
 0x41a   :  { %330 = vrot.lane.b32.xlu0 %v1587_v49, %s1661_s17 }
 0x48c   :  { %v331_v50 = vpop.permute.xlu0 %330 }
 0x48d   :  { %v333_v51 = vmul.f32 %v1585_v40, %v331_v50 }
 0x48f   :  { %335 = vrot.lane.b32.xlu1 %v333_v51, %s1664_s14 }
 0x501   :  { %v336_v52 = vpop.permute.xlu1 %335 }
 0x502   :  { %1438 = vmatmul.mubr.msk.f32.vlgmr.msra.gmra.mxu1 %vm232_vm3, %v336_v52 }
 0x503   :  { %1452 = vmatpush3.msra.mxu1 %v1765_v17  ;;  %1459 = vmatprep.mubr.msk.f32.mxu1 %vm1663_vm2, %v1662_v18 }
 0x504   :  { %1453 = vmatprep.subr.mxu1 %v1662_v18 }
 0x505   :  { %1454 = vmatpush3.msra.mxu1 %v1776_v20 }
 0x506   :  { %1455 = vmatprep.subr.mxu1 %v1662_v18 }
 0x507   :  { %1456 = vmatpush3.msra.mxu1 %v1788_v22 }
 0x508   :  { %1457 = vmatprep.subr.mxu1 %v1662_v18 }
 0x509   :  { %1458 = vmatpush3.msra.mxu1 %v1798_v23 }
 0x50a   :  { %1473 = vmatprep.subr.mxu1 %v1662_v18 }
 0x5c2   :  { %v405_v56 = vpop.f32.mrf.mxu1 }
 0x5c3   :  { %v409_v57 = vadd.f32 %v405_v56, %v183_v55 }
 0x5c4   :  { %v1439_v58 = vpop.f32.mrf.mxu1 }
 0x5c5   :  { %1588 = vtanh.f32 %v409_v57  ;;  %v1309_v60 = vmul.f32 -1.442695, %v409_v57 }
 0x5c7   :  { %1590 = vpow2.f32 %v1309_v60 }
 0x5d2   :  { %v1589_v59 = vpop.eup %1588 }
 0x5d3   :  { %419 = vrot.lane.b32.xlu0 %v1589_v59, %s1661_s17 }
 0x5d4   :  { %v1591_v61 = vpop.eup %1590 }
 0x5d5   :  { %v413_v62 = vadd.f32 1.0, %v1591_v61 }
 0x5d7   :  { %1592 = vrcp.f32 %v413_v62 }
 0x5e4   :  { %v1593_v63 = vpop.eup %1592 }
 0x5e5   :  { %v417_v2 = vmul.f32 %v1593_v63, %v327_v46 }
 0x645   :  { %v420_v0 = vpop.permute.xlu0 %419 }
 0x646   :  { %v422_v1 = vmul.f32 %v1593_v63, %v420_v0 }
 0x648   :  { %424 = vrot.lane.b32.xlu1 %v422_v1, %s1661_s17 }
 0x6ba   :  { %v425_v3 = vpop.permute.xlu1 %424 }
 0x6bb   :  { %v427_v4 = vadd.f32 %v425_v3, %v417_v2  ;;  %v203_v3 = vadd.f32 %v1752_v5, %v1832_v31 }
 0x6bd   :  { %1594 = vtanh.f32 %v427_v4 }
 0x6ca   :  { %v1595_v6 = vpop.eup %1594 }
 0x6cb   :  { %430 = vrot.lane.b32.xlu0 %v1595_v6, %s1661_s17 }
 0x73d   :  { %v431_v7 = vpop.permute.xlu0 %430 }
 0x73e   :  { %v433_v8 = vmul.f32 %v1593_v63, %v431_v7 }
 0x740   :  { %435 = vrot.lane.b32.xlu1 %v433_v8, %s1664_s14 }
 0x7b2   :  { %v436_v9 = vpop.permute.xlu1 %435 }
 0x7b3   :  { %1449 = vmatmul.mubr.msk.f32.vlgmr.msra.gmra.mxu0 %vm232_vm3, %v436_v9 }
 0x7b4   :  { %1463 = vmatpush3.msra.mxu0 %v1765_v17  ;;  %1470 = vmatprep.mubr.msk.f32.mxu0 %vm1663_vm2, %v1662_v18 }
 0x7b5   :  { %1464 = vmatprep.subr.mxu0 %v1662_v18 }
 0x7b6   :  { %1465 = vmatpush3.msra.mxu0 %v1776_v20 }
 0x7b7   :  { %1466 = vmatprep.subr.mxu0 %v1662_v18 }
 0x7b8   :  { %1467 = vmatpush3.msra.mxu0 %v1788_v22 }
 0x7b9   :  { %1468 = vmatprep.subr.mxu0 %v1662_v18 }
 0x7ba   :  { %1469 = vmatpush3.msra.mxu0 %v1798_v23 }
 0x7bb   :  { %1484 = vmatprep.subr.mxu0 %v1662_v18 }
 0x873   :  { %v505_v11 = vpop.f32.mrf.mxu0 }
 0x874   :  { %v509_v12 = vadd.f32 %v505_v11, %v188_v10 }
 0x875   :  { %v1450_v13 = vpop.f32.mrf.mxu0 }
 0x876   :  { %1596 = vtanh.f32 %v509_v12  ;;  %v1311_v15 = vmul.f32 -1.442695, %v509_v12 }
 0x878   :  { %1598 = vpow2.f32 %v1311_v15 }
 0x883   :  { %v1597_v14 = vpop.eup %1596 }
 0x884   :  { %519 = vrot.lane.b32.xlu0 %v1597_v14, %s1661_s17 }
 0x885   :  { %v1599_v16 = vpop.eup %1598 }
 0x886   :  { %v513_v19 = vadd.f32 1.0, %v1599_v16 }
 0x888   :  { %1600 = vrcp.f32 %v513_v19 }
 0x895   :  { %v1601_v21 = vpop.eup %1600 }
 0x896   :  { %v517_v26 = vmul.f32 %v1601_v21, %v427_v4 }
 0x8f6   :  { %v520_v24 = vpop.permute.xlu0 %519 }
 0x8f7   :  { %v522_v25 = vmul.f32 %v1601_v21, %v520_v24 }
 0x8f9   :  { %524 = vrot.lane.b32.xlu1 %v522_v25, %s1661_s17 }
 0x96b   :  { %v525_v27 = vpop.permute.xlu1 %524 }
 0x96c   :  { %v527_v32 = vadd.f32 %v525_v27, %v517_v26  ;;  %v208_v26 = vadd.f32 %v1830_v30, %v1752_v5  ;;  %v937_v30 = vld [vmem:[#allocation3 + $0x18] sm:$0xff] }
 0x96e   :  { %1602 = vtanh.f32 %v527_v32 }
 0x97b   :  { %v1603_v33 = vpop.eup %1602 }
 0x97c   :  { %530 = vrot.lane.b32.xlu0 %v1603_v33, %s1661_s17 }
 0x9ee   :  { %v531_v34 = vpop.permute.xlu0 %530 }
 0x9ef   :  { %v533_v35 = vmul.f32 %v1601_v21, %v531_v34 }
 0x9f1   :  { %535 = vrot.lane.b32.xlu1 %v533_v35, %s1664_s14 }
 0xa63   :  { %v536_v36 = vpop.permute.xlu1 %535 }
 0xa64   :  { %1460 = vmatmul.mubr.msk.f32.vlgmr.msra.gmra.mxu1 %vm232_vm3, %v536_v36 }
 0xa65   :  { %1474 = vmatpush3.msra.mxu1 %v1765_v17  ;;  %1481 = vmatprep.mubr.msk.f32.mxu1 %vm1663_vm2, %v1662_v18 }
 0xa66   :  { %1475 = vmatprep.subr.mxu1 %v1662_v18 }
 0xa67   :  { %1476 = vmatpush3.msra.mxu1 %v1776_v20 }
 0xa68   :  { %1477 = vmatprep.subr.mxu1 %v1662_v18 }
 0xa69   :  { %1478 = vmatpush3.msra.mxu1 %v1788_v22 }
 0xa6a   :  { %1479 = vmatprep.subr.mxu1 %v1662_v18 }
 0xa6b   :  { %1480 = vmatpush3.msra.mxu1 %v1798_v23 }
 0xa6c   :  { %1495 = vmatprep.subr.mxu1 %v1662_v18 }
 0xb24   :  { %v605_v38 = vpop.f32.mrf.mxu1 }
 0xb25   :  { %v609_v39 = vadd.f32 %v605_v38, %v193_v37 }
 0xb26   :  { %v1461_v40 = vpop.f32.mrf.mxu1 }
 0xb27   :  { %1604 = vtanh.f32 %v609_v39  ;;  %v1313_v42 = vmul.f32 -1.442695, %v609_v39 }
 0xb29   :  { %1606 = vpow2.f32 %v1313_v42 }
 0xb34   :  { %v1605_v41 = vpop.eup %1604 }
 0xb35   :  { %619 = vrot.lane.b32.xlu0 %v1605_v41, %s1661_s17 }
 0xb36   :  { %v1607_v43 = vpop.eup %1606 }
 0xb37   :  { %v613_v44 = vadd.f32 1.0, %v1607_v43  ;;  %v936_v43 = vld [vmem:[#allocation3 + $0x10] sm:$0xff] }
 0xb39   :  { %1608 = vrcp.f32 %v613_v44  ;;  %v935_v44 = vld [vmem:[#allocation3 + $0x8] sm:$0xff] }
 0xb46   :  { %v1609_v45 = vpop.eup %1608 }
 0xb47   :  { %v617_v48 = vmul.f32 %v1609_v45, %v527_v32 }
 0xba7   :  { %v620_v46 = vpop.permute.xlu0 %619 }
 0xba8   :  { %v622_v47 = vmul.f32 %v1609_v45, %v620_v46 }
 0xbaa   :  { %624 = vrot.lane.b32.xlu1 %v622_v47, %s1661_s17  ;;  %v1028_v47 = vld [vmem:[%s2058_s6 + $0x38] sm:$0xff] }
 0xc1c   :  { %v625_v49 = vpop.permute.xlu1 %624 }
 0xc1d   :  { %v627_v29 = vadd.f32 %v625_v49, %v617_v48  ;;  %v1027_v48 = vld [vmem:[%s2058_s6 + $0x30] sm:$0xff]  ;;  %v1026_v49 = vld [vmem:[%s2058_s6 + $0x28] sm:$0xff] }
 0xc1f   :  { %1610 = vtanh.f32 %v627_v29 }
 0xc2c   :  { %v1611_v50 = vpop.eup %1610 }
 0xc2d   :  { %630 = vrot.lane.b32.xlu0 %v1611_v50, %s1661_s17  ;;  %v1024_v50 = vld [vmem:[%s2058_s6 + $0x18] sm:$0xff] }
 0xc9f   :  { %v631_v51 = vpop.permute.xlu0 %630 }
 0xca0   :  { %v633_v52 = vmul.f32 %v1609_v45, %v631_v51  ;;  %v934_v45 = vld [vmem:[#allocation3] sm:$0xff] }
 0xca2   :  { %635 = vrot.lane.b32.xlu1 %v633_v52, %s1664_s14 }
 0xd14   :  { %v636_v53 = vpop.permute.xlu1 %635 }
 0xd15   :  { %1471 = vmatmul.mubr.msk.f32.vlgmr.msra.gmra.mxu0 %vm232_vm3, %v636_v53 }
 0xd16   :  { %1485 = vmatpush3.msra.mxu0 %v1765_v17  ;;  %1492 = vmatprep.mubr.msk.f32.mxu0 %vm1663_vm2, %v1662_v18  ;;  %v198_v17 = vadd.f32 %v1826_v28, %v1752_v5 }
 0xd17   :  { %1486 = vmatprep.subr.mxu0 %v1662_v18 }
 0xd18   :  { %1487 = vmatpush3.msra.mxu0 %v1776_v20 }
 0xd19   :  { %1488 = vmatprep.subr.mxu0 %v1662_v18 }
 0xd1a   :  { %1489 = vmatpush3.msra.mxu0 %v1788_v22 }
 0xd1b   :  { %1490 = vmatprep.subr.mxu0 %v1662_v18 }
 0xd1c   :  { %1491 = vmatpush3.msra.mxu0 %v1798_v23 }
 0xd1d   :  { %1506 = vmatprep.subr.mxu0 %v1662_v18 }
 0xdd5   :  { %v705_v54 = vpop.f32.mrf.mxu0 }
 0xdd6   :  { %v709_v55 = vadd.f32 %v705_v54, %v198_v17  ;;  %v1023_v17 = vld [vmem:[%s2058_s6 + $0x10] sm:$0xff]  ;;  %v1022_v54 = vld [vmem:[%s2058_s6 + $0x8] sm:$0xff] }
 0xdd7   :  { %v1472_v56 = vpop.f32.mrf.mxu0 }
 0xdd8   :  { %1612 = vtanh.f32 %v709_v55  ;;  %v1315_v20 = vmul.f32 -1.442695, %v709_v55  ;;  %v1021_v55 = vld [vmem:[%s2058_s6] sm:$0xff]  ;;  %v1118_v56 = vld [vmem:[%s2060_s8 + $0x38] sm:$0xff] }
 0xdda   :  { %1614 = vpow2.f32 %v1315_v20  ;;  %v1116_v20 = vld [vmem:[%s2060_s8 + $0x28] sm:$0xff] }
 0xde5   :  { %v1613_v57 = vpop.eup %1612 }
 0xde6   :  { %719 = vrot.lane.b32.xlu0 %v1613_v57, %s1661_s17  ;;  %v1117_v57 = vld [vmem:[%s2060_s8 + $0x30] sm:$0xff] }
 0xde7   :  { %v1615_v58 = vpop.eup %1614 }
 0xde8   :  { %v713_v22 = vadd.f32 1.0, %v1615_v58  ;;  %v1115_v58 = vld [vmem:[%s2060_s8 + $0x20] sm:$0xff] }
 0xdea   :  { %1616 = vrcp.f32 %v713_v22  ;;  %v1114_v22 = vld [vmem:[%s2060_s8 + $0x18] sm:$0xff] }
 0xdf7   :  { %v1617_v59 = vpop.eup %1616 }
 0xdf8   :  { %v717_v61 = vmul.f32 %v1617_v59, %v627_v29  ;;  %v1025_v29 = vld [vmem:[%s2058_s6 + $0x20] sm:$0xff] }
 0xe58   :  { %v720_v60 = vpop.permute.xlu0 %719 }
 0xe59   :  { %v722_v23 = vmul.f32 %v1617_v59, %v720_v60 }
 0xe5b   :  { %724 = vrot.lane.b32.xlu1 %v722_v23, %s1661_s17 }
 0xecd   :  { %v725_v62 = vpop.permute.xlu1 %724 }
 0xece   :  { %v727_v28 = vadd.f32 %v725_v62, %v717_v61 }
 0xed0   :  { %1618 = vtanh.f32 %v727_v28 }
 0xedd   :  { %v1619_v63 = vpop.eup %1618 }
 0xede   :  { %730 = vrot.lane.b32.xlu0 %v1619_v63, %s1661_s17  ;;  %v1112_v63 = vld [vmem:[%s2060_s8 + $0x8] sm:$0xff] }
 0xf50   :  { %v731_v0 = vpop.permute.xlu0 %730 }
 0xf51   :  { %v733_v1 = vmul.f32 %v1617_v59, %v731_v0  ;;  %v1320_v59 = vld [vmem:[%s2057_s5] ss:$0 sm:$0xff] }
 0xf52   :  { %v1111_v0 = vld [vmem:[%s2060_s8] sm:$0xff] }
 0xf53   :  { %735 = vrot.lane.b32.xlu1 %v733_v1, %s1664_s14  ;;  %v1207_v1 = vld [vmem:[%s2062_s10 + $0x38] sm:$0xff] }
 0xfc5   :  { %v736_v2 = vpop.permute.xlu1 %735 }
 0xfc6   :  { %1482 = vmatmul.mubr.msk.f32.vlgmr.msra.gmra.mxu1 %vm232_vm3, %v736_v2  ;;  %v1206_v2 = vld [vmem:[%s2062_s10 + $0x30] sm:$0xff] }
 0xfc7   :  { %1503 = vmatprep.mubr.msk.f32.mxu1 %vm1663_vm2, %v1662_v18  ;;  %1496 = vmatpush3.msra.mxu1 %v937_v30 }
 0xfc8   :  { %1497 = vmatprep.subr.mxu1 %v1662_v18 }
 0xfc9   :  { %1498 = vmatpush3.msra.mxu1 %v936_v43 }
 0xfca   :  { %1499 = vmatprep.subr.mxu1 %v1662_v18 }
 0xfcb   :  { %1500 = vmatpush3.msra.mxu1 %v935_v44 }
 0xfcc   :  { %1501 = vmatprep.subr.mxu1 %v1662_v18 }
 0xfcd   :  { %1502 = vmatpush3.msra.mxu1 %v934_v45 }
 0xfce   :  { %1525 = vmatprep.subr.mxu1 %v1662_v18 }
0x1086   :  { %v805_v4 = vpop.f32.mrf.mxu1 }
0x1087   :  { %v809_v6 = vadd.f32 %v805_v4, %v203_v3  ;;  %v1205_v3 = vld [vmem:[%s2062_s10 + $0x28] sm:$0xff]  ;;  %v1204_v4 = vld [vmem:[%s2062_s10 + $0x20] sm:$0xff] }
0x1088   :  { %v1483_v7 = vpop.f32.mrf.mxu1 }
0x1089   :  { %1620 = vtanh.f32 %v809_v6  ;;  %v1317_v9 = vmul.f32 -1.442695, %v809_v6  ;;  %v1203_v6 = vld [vmem:[%s2062_s10 + $0x18] sm:$0xff]  ;;  %v1322_v7 = vld [vmem:[%s2059_s7] ss:$0 sm:$0xff] }
0x108b   :  { %1622 = vpow2.f32 %v1317_v9 }
0x1096   :  { %v1621_v8 = vpop.eup %1620 }
0x1097   :  { %819 = vrot.lane.b32.xlu0 %v1621_v8, %s1661_s17 }
0x1098   :  { %v1623_v10 = vpop.eup %1622 }
0x1099   :  { %v813_v11 = vadd.f32 1.0, %v1623_v10 }
0x109b   :  { %1624 = vrcp.f32 %v813_v11 }
0x10a8   :  { %v1625_v12 = vpop.eup %1624 }
0x10a9   :  { %v817_v15 = vmul.f32 %v1625_v12, %v727_v28  ;;  %v1113_v28 = vld [vmem:[%s2060_s8 + $0x10] sm:$0xff] }
0x1109   :  { %v820_v13 = vpop.permute.xlu0 %819 }
0x110a   :  { %v822_v14 = vmul.f32 %v1625_v12, %v820_v13  ;;  %v1201_v13 = vld [vmem:[%s2062_s10 + $0x8] sm:$0xff] }
0x110c   :  { %824 = vrot.lane.b32.xlu1 %v822_v14, %s1661_s17  ;;  %v1200_v14 = vld [vmem:[%s2062_s10] sm:$0xff] }
0x117e   :  { %v825_v16 = vpop.permute.xlu1 %824 }
0x117f   :  { %v827_v31 = vadd.f32 %v825_v16, %v817_v15  ;;  %v1324_v15 = vld [vmem:[%s2061_s9] ss:$0 sm:$0xff] }
0x1181   :  { %1626 = vtanh.f32 %v827_v31 }
0x118e   :  { %v1627_v19 = vpop.eup %1626 }
0x118f   :  { %830 = vrot.lane.b32.xlu0 %v1627_v19, %s1661_s17 }
0x1201   :  { %v831_v21 = vpop.permute.xlu0 %830 }
0x1202   :  { %v833_v24 = vmul.f32 %v1625_v12, %v831_v21  ;;  %v1202_v12 = vld [vmem:[%s2062_s10 + $0x10] sm:$0xff] }
0x1204   :  { %835 = vrot.lane.b32.xlu1 %v833_v24, %s1664_s14  ;;  %v1326_v24 = vld [vmem:[#allocation2] ss:$0 sm:$0xff] }
0x1276   :  { %v836_v25 = vpop.permute.xlu1 %835 }
0x1277   :  { %1493 = vmatmul.mubr.msk.f32.vlgmr.msra.gmra.mxu0 %vm232_vm3, %v836_v25 }
0x1278   :  { %1522 = vmatprep.mubr.msk.f32.mxu0 %vm1663_vm2, %v1662_v18  ;;  %1507 = vmatpush3.msra.mxu0 %v1028_v47 }
0x1279   :  { %1508 = vmatprep.subr.mxu0 %v1662_v18 }
0x127a   :  { %1509 = vmatpush3.msra.mxu0 %v1027_v48 }
0x127b   :  { %1510 = vmatprep.subr.mxu0 %v1662_v18 }
0x127c   :  { %1511 = vmatpush3.msra.mxu0 %v1026_v49 }
0x127d   :  { %1512 = vmatprep.subr.mxu0 %v1662_v18 }
0x127e   :  { %1513 = vmatpush3.msra.mxu0 %v1025_v29 }
0x127f   :  { %1514 = vmatprep.subr.mxu0 %v1662_v18 }
0x1280   :  { %1515 = vmatpush3.msra.mxu0 %v1024_v50 }
0x1281   :  { %1516 = vmatprep.subr.mxu0 %v1662_v18 }
0x1282   :  { %1517 = vmatpush3.msra.mxu0 %v1023_v17 }
0x1283   :  { %1518 = vmatprep.subr.mxu0 %v1662_v18 }
0x1284   :  { %1519 = vmatpush3.msra.mxu0 %v1022_v54 }
0x1285   :  { %1520 = vmatprep.subr.mxu0 %v1662_v18 }
0x1286   :  { %1521 = vmatpush3.msra.mxu0 %v1021_v55 }
0x1287   :  { %1544 = vmatprep.subr.mxu0 %v1662_v18 }
0x1337   :  { %v905_v27 = vpop.f32.mrf.mxu0 }
0x1338   :  { %v909_v32 = vadd.f32 %v905_v27, %v208_v26 }
0x1339   :  { %v1494_v33 = vpop.f32.mrf.mxu0 }
0x133a   :  { %1628 = vtanh.f32 %v909_v32  ;;  %v1319_v35 = vmul.f32 -1.442695, %v909_v32 }
0x133c   :  { %1630 = vpow2.f32 %v1319_v35 }
0x1347   :  { %v1629_v34 = vpop.eup %1628 }
0x1348   :  { %919 = vrot.lane.b32.xlu0 %v1629_v34, %s1661_s17 }
0x1349   :  { %v1631_v36 = vpop.eup %1630 }
0x134a   :  { %v913_v37 = vadd.f32 1.0, %v1631_v36 }
0x134c   :  { %1632 = vrcp.f32 %v913_v37 }
0x1359   :  { %v1633_v38 = vpop.eup %1632 }
0x135a   :  { %v917_v41 = vmul.f32 %v1633_v38, %v827_v31 }
0x13ba   :  { %v920_v39 = vpop.permute.xlu0 %919 }
0x13bb   :  { %v922_v40 = vmul.f32 %v1633_v38, %v920_v39 }
0x13bd   :  { %924 = vrot.lane.b32.xlu1 %v922_v40, %s1661_s17 }
0x142f   :  { %v925_v42 = vpop.permute.xlu1 %924 }
0x1430   :  { %v927_v5 = vadd.f32 %v925_v42, %v917_v41 }
0x1432   :  { %1634 = vtanh.f32 %v927_v5 }
0x143f   :  { %v1635_v46 = vpop.eup %1634 }
0x1440   :  { %930 = vrot.lane.b32.xlu0 %v1635_v46, %s1661_s17 }
0x14b2   :  { %v931_v51 = vpop.permute.xlu0 %930 }
0x14b3   :  { %v933_v52 = vmul.f32 %v1633_v38, %v931_v51 }
0x14b5   :  { %946 = vrot.lane.b32.xlu1 %v933_v52, %s1664_s14 }
0x1527   :  { %v947_v53 = vpop.permute.xlu1 %946 }
0x1528   :  { %1504 = vmatmul.mubr.msk.f32.vlgmr.msra.gmra.mxu1 %vm232_vm3, %v947_v53 }
0x1529   :  { %1541 = vmatprep.mubr.msk.f32.mxu1 %vm1663_vm2, %v1662_v18  ;;  %1526 = vmatpush3.msra.mxu1 %v1118_v56 }
0x152a   :  { %1527 = vmatprep.subr.mxu1 %v1662_v18 }
0x152b   :  { %1528 = vmatpush3.msra.mxu1 %v1117_v57 }
0x152c   :  { %1529 = vmatprep.subr.mxu1 %v1662_v18 }
0x152d   :  { %1530 = vmatpush3.msra.mxu1 %v1116_v20 }
0x152e   :  { %1531 = vmatprep.subr.mxu1 %v1662_v18 }
0x152f   :  { %1532 = vmatpush3.msra.mxu1 %v1115_v58 }
0x1530   :  { %1533 = vmatprep.subr.mxu1 %v1662_v18 }
0x1531   :  { %1534 = vmatpush3.msra.mxu1 %v1114_v22 }
0x1532   :  { %1535 = vmatprep.subr.mxu1 %v1662_v18 }
0x1533   :  { %1536 = vmatpush3.msra.mxu1 %v1113_v28 }
0x1534   :  { %1537 = vmatprep.subr.mxu1 %v1662_v18 }
0x1535   :  { %1538 = vmatpush3.msra.mxu1 %v1112_v63 }
0x1536   :  { %1539 = vmatprep.subr.mxu1 %v1662_v18 }
0x1537   :  { %1540 = vmatpush3.msra.mxu1 %v1111_v0 }
0x15e8   :  { %v1016_v60 = vpop.f32.mrf.mxu1 }
0x15e9   :  { %v1017_v23 = vadd.f32 %v1320_v59, %v1016_v60 }
0x15ea   :  { %v1505_v61 = vpop.f32.mrf.mxu1 }
0x15eb   :  { %v1020_v62 = vmax.f32 %v1017_v23, 0.0 }
0x15ed   :  { %1523 = vmatmul.mubr.msk.f32.vlgmr.msra.gmra.mxu0 %vm1036_vm4, %v1020_v62 }
0x15ee   :  { %1560 = vmatprep.mubr.msk.f32.mxu0 %vm1663_vm2, %v1662_v18  ;;  %1545 = vmatpush3.msra.mxu0 %v1207_v1 }
0x15ef   :  { %1546 = vmatprep.subr.mxu0 %v1662_v18 }
0x15f0   :  { %1547 = vmatpush3.msra.mxu0 %v1206_v2 }
0x15f1   :  { %1548 = vmatprep.subr.mxu0 %v1662_v18 }
0x15f2   :  { %1549 = vmatpush3.msra.mxu0 %v1205_v3 }
0x15f3   :  { %1550 = vmatprep.subr.mxu0 %v1662_v18 }
0x15f4   :  { %1551 = vmatpush3.msra.mxu0 %v1204_v4 }
0x15f5   :  { %1552 = vmatprep.subr.mxu0 %v1662_v18 }
0x15f6   :  { %1553 = vmatpush3.msra.mxu0 %v1203_v6 }
0x15f7   :  { %1554 = vmatprep.subr.mxu0 %v1662_v18 }
0x15f8   :  { %1555 = vmatpush3.msra.mxu0 %v1202_v12 }
0x15f9   :  { %1556 = vmatprep.subr.mxu0 %v1662_v18 }
0x15fa   :  { %1557 = vmatpush3.msra.mxu0 %v1201_v13 }
0x15fb   :  { %1558 = vmatprep.subr.mxu0 %v1662_v18 }
0x15fc   :  { %1559 = vmatpush3.msra.mxu0 %v1200_v14 }
0x16ad   :  { %v1106_v8 = vpop.f32.mrf.mxu0 }
0x16ae   :  { %v1107_v9 = vadd.f32 %v1322_v7, %v1106_v8 }
0x16af   :  { %v1524_v10 = vpop.f32.mrf.mxu0 }
0x16b0   :  { %v1110_v11 = vmax.f32 %v1107_v9, 0.0 }
0x16b2   :  { %1542 = vmatmul.mubr.msk.f32.vlgmr.msra.gmra.mxu1 %vm1036_vm4, %v1110_v11 }
0x1772   :  { %v1195_v16 = vpop.f32.mrf.mxu1 }
0x1773   :  { %v1196_v31 = vadd.f32 %v1324_v15, %v1195_v16 }
0x1774   :  { %v1543_v19 = vpop.f32.mrf.mxu1 }
0x1775   :  { %v1199_v21 = vmax.f32 %v1196_v31, 0.0 }
0x1777   :  { %1561 = vmatmul.mubr.msk.f32.vlgmr.msra.gmra.mxu0 %vm1036_vm4, %v1199_v21 }
0x1837   :  { %v1284_v25 = vpop.f32.mrf.mxu0 }
0x1838   :  { %v1285_v26 = vadd.f32 %v1326_v24, %v1284_v25 }
0x1839   :  { %v1562_v18 = vpop.f32.mrf.mxu0 }
0x183a   :  { %1289 = vst.msk [vmem:[%s2064_s12] sm:$0xff] %vm1288_vm5, %v1285_v26 }
0x183b   :  { %1294 = vsyncpa [#allocation4], 1 }

</bundles_post_ra>
